<compile_context>
chip_gen: v7x
topology: tpu7x:2x2x1
jax: 0.10.0
libtpu: 0.0.40
codegen_flags: <defaults>
</compile_context>

<pallas_src>
import jax
import jax.numpy as jnp
from jax.experimental import pallas as pl
from jax.experimental.pallas import tpu as pltpu

_AMIN = 1e-10          # torchaudio.transforms.AmplitudeToDB default amin
_MULTIPLIER = 10.0     # stype="power" -> multiplier = 10 ; db_multiplier = log10(max(amin, 1)) = 0
_LN10 = 2.302585092994046

_LANE_WIDTHS = (4096, 2048, 1024, 512, 256, 128)
_MiB = 1024 * 1024


# ---------------------------------------------------------------------------
# Kernels
# ---------------------------------------------------------------------------
def _fused_single_block_kernel(x_ref, o_ref):
    """Whole array resident in VMEM: min/max of clamp(x) (cheap VPU), scalar dB
    conversion, then fused log + scale/bias normalize. No full-size x_db temp."""
    xc = jnp.maximum(x_ref[...].astype(jnp.float32), _AMIN)
    mn = jnp.min(xc)
    mx = jnp.max(xc)
    db_min = _MULTIPLIER * jnp.log10(mn)
    db_max = _MULTIPLIER * jnp.log10(mx)
    # NOTE: mx == mn (constant input) yields NaN/Inf, same as the PyTorch module.
    inv = 1.0 / (db_max - db_min)
    scale = (_MULTIPLIER / _LN10) * inv
    bias = -db_min * inv
    o_ref[...] = (jnp.log(xc) * scale + bias).astype(o_ref.dtype)


def _minmax_kernel(x_ref, mn_ref, mx_ref):
    """Pass 1: per-tile min/max of clamp(x, amin).

    Reduces only across groups of 8 sublane-rows (pure VPU elementwise min/max of
    vreg slabs) and writes an (8, cols) lane-dense partial per tile, so there is
    no cross-lane XLU reduce / scalar broadcast serializing the tail of a step.
    """
    xc = jnp.maximum(x_ref[...].astype(jnp.float32), _AMIN)
    xr = xc.reshape(-1, 8, xc.shape[-1])
    mn_ref[...] = jnp.min(xr, axis=0, keepdims=True)
    mx_ref[...] = jnp.max(xr, axis=0, keepdims=True)


def _db_normalize_kernel(scale_ref, bias_ref, x_ref, o_ref):
    """Pass 2: out = log(clamp(x)) * scale + bias, scalars (folded epilogue) from SMEM."""
    scale = scale_ref[0, 0]
    bias = bias_ref[0, 0]
    xc = jnp.maximum(x_ref[...].astype(jnp.float32), _AMIN)
    o_ref[...] = (jnp.log(xc) * scale + bias).astype(o_ref.dtype)


# ---------------------------------------------------------------------------
# Generation-aware sizing
# ---------------------------------------------------------------------------
def _generation_config():
    kind = ""
    try:
        kind = jax.devices()[0].device_kind.lower()
    except Exception:
        pass
    if "v7" in kind:
        # 64 MiB VMEM per TensorCore: 8 MiB tiles -> ~32 MiB resident in pass 2.
        return {"single_block_bytes": 10 * _MiB,
                "max_tile_bytes": 8 * _MiB,
                "vmem_limit_bytes": 48 * _MiB}
    if "v5" in kind or "v6" in kind:
        # 128 MiB VMEM: 16 MiB tiles -> ~64 MiB resident in pass 2.
        return {"single_block_bytes": 16 * _MiB,
                "max_tile_bytes": 16 * _MiB,
                "vmem_limit_bytes": 96 * _MiB}
    # Unknown / future chip: conservative sizing that fits a 64 MiB VMEM budget.
    return {"single_block_bytes": 10 * _MiB,
            "max_tile_bytes": 8 * _MiB,
            "vmem_limit_bytes": 48 * _MiB}


# ---------------------------------------------------------------------------
# Layout / tiling helpers
# ---------------------------------------------------------------------------
def _largest_aligned_divisor(rows, cap):
    """Largest t (multiple of 8) with t <= cap and rows % t == 0. 0 if none."""
    best = 0
    t = 8
    limit = min(cap, rows)
    while t <= limit:
        if rows % t == 0:
            best = t
        t += 8
    return best


def _choose_tiled_layout(total, itemsize, max_tile_bytes):
    """Return (rows, cols, block_rows, padded_total).

    Guarantees: cols is a multiple of 128, block_rows a multiple of 8, and
    rows % block_rows == 0 — every block is (8,128)-aligned and lane-dense.
    """
    bpe = max(4, itemsize)                       # the output tile is always f32
    for lane in _LANE_WIDTHS:
        if total % lane:
            continue
        rows = total // lane
        cap = max_tile_bytes // (lane * bpe)
        br = _largest_aligned_divisor(rows, cap)
        if br:
            return rows, lane, br, total
    # Last resort (awkward flattened lengths): edge-pad up to a whole number of
    # lane-dense (block_rows, 1024) tiles. Edge padding replicates existing
    # values, so the global min/max are unchanged; the tail is sliced off after.
    lane = 1024
    br = max(8, (max_tile_bytes // (lane * bpe)) // 8 * 8)
    tile_elems = br * lane
    padded_total = -(-total // tile_elems) * tile_elems
    rows = padded_total // lane
    return rows, lane, br, padded_total


# ---------------------------------------------------------------------------
# Wrapper
# ---------------------------------------------------------------------------
def normalize(x: jax.Array,
              *,
              single_block_bytes: int | None = None,
              max_tile_bytes: int | None = None) -> jax.Array:
    """Pallas equivalent of the PyTorch `Normalize` module forward pass."""
    cfg = _generation_config()
    if single_block_bytes is None:
        single_block_bytes = cfg["single_block_bytes"]
    if max_tile_bytes is None:
        max_tile_bytes = cfg["max_tile_bytes"]
    vmem_limit = cfg["vmem_limit_bytes"]

    orig_shape = x.shape
    total = 1
    for d in orig_shape:
        total *= d
    itemsize = jnp.dtype(x.dtype).itemsize
    out_dtype = x.dtype if jnp.issubdtype(x.dtype, jnp.floating) else jnp.float32

    # -------- single-block fast path: whole array in VMEM, one read + one write --------
    if total * 4 <= single_block_bytes:
        rows, cols = 1, total
        if x.ndim >= 2:
            cols = orig_shape[-1]
            rows = total // cols
        for lane in _LANE_WIDTHS:                # prefer a lane-dense view
            if total % lane == 0:
                rows, cols = total // lane, lane
                break
        out2d = pl.pallas_call(
            _fused_single_block_kernel,
            out_shape=jax.ShapeDtypeStruct((rows, cols), out_dtype),
            compiler_params=pltpu.CompilerParams(vmem_limit_bytes=vmem_limit),
        )(x.reshape(rows, cols))
        return out2d.reshape(orig_shape)

    # -------- tiled two-pass path --------
    rows, cols, br, padded_total = _choose_tiled_layout(total, itemsize, max_tile_bytes)
    x_flat = x.reshape(-1)
    if padded_total != total:
        x_flat = jnp.pad(x_flat, (0, padded_total - total), mode="edge")
    x2d = x_flat.reshape(rows, cols)
    num_tiles = rows // br

    tile_spec = pl.BlockSpec((br, cols), lambda i: (i, 0))
    part_spec = pl.BlockSpec((1, 8, cols), lambda i: (i, 0, 0))
    cparams = pltpu.CompilerParams(
        dimension_semantics=("parallel",),
        vmem_limit_bytes=vmem_limit,
    )

    # Pass 1: per-tile min/max of clamp(x) — read-only, tiny lane-dense partials.
    part_min, part_max = pl.pallas_call(
        _minmax_kernel,
        grid=(num_tiles,),
        in_specs=[tile_spec],
        out_specs=(part_spec, part_spec),
        out_shape=(
            jax.ShapeDtypeStruct((num_tiles, 8, cols), jnp.float32),
            jax.ShapeDtypeStruct((num_tiles, 8, cols), jnp.float32),
        ),
        compiler_params=cparams,
    )(x2d)

    # Tiny partial reduction + scalar epilogue hoisted out of the per-tile body.
    g_min = jnp.min(part_min)
    g_max = jnp.max(part_max)
    db_min = _MULTIPLIER * jnp.log10(g_min)      # log10 monotone: commutes with min/max
    db_max = _MULTIPLIER * jnp.log10(g_max)
    inv = 1.0 / (db_max - db_min)                # NaN/Inf on constant input, same as PyTorch
    scale = ((_MULTIPLIER / _LN10) * inv).reshape(1, 1).astype(jnp.float32)
    bias = (-db_min * inv).reshape(1, 1).astype(jnp.float32)

    smem_spec = pl.BlockSpec((1, 1), lambda i: (0, 0),
                             memory_space=pltpu.MemorySpace.SMEM)

    # Pass 2: dB conversion + normalize, fused, folded into one EUP log + 2 VPU ops.
    out2d = pl.pallas_call(
        _db_normalize_kernel,
        grid=(num_tiles,),
        in_specs=[smem_spec, smem_spec, tile_spec],
        out_specs=tile_spec,
        out_shape=jax.ShapeDtypeStruct((rows, cols), out_dtype),
        compiler_params=cparams,
    )(scale, bias, x2d)

    out_flat = out2d.reshape(-1)
    if padded_total != total:
        out_flat = out_flat[:total]
    return out_flat.reshape(orig_shape)


# ---------------------------------------------------------------------------
# Demo / correctness check
# ---------------------------------------------------------------------------
if __name__ == "__main__":
    key = jax.random.PRNGKey(0)
    # Synthetic "power spectrogram"-like input, NCHW: [batch, channel, freq, time]
    x = jax.random.uniform(key, (2, 4, 16, 16), dtype=jnp.float32, minval=0.0, maxval=5.0)

    out = normalize(x)                            # single-block fast path
    jax.block_until_ready(out)
    x_db_ref = 10.0 * jnp.log10(jnp.maximum(x, 1e-10))
    ref = (x_db_ref - x_db_ref.min()) / (x_db_ref.max() - x_db_ref.min())
    assert out.shape == x.shape and out.dtype == jnp.float32
    assert jnp.allclose(out, ref, atol=1e-5, rtol=1e-5)

    # Tiled two-pass path (forced small tiles -> multi-step grid).
    x2 = jax.random.uniform(jax.random.PRNGKey(1), (2, 4, 64, 128),
                            dtype=jnp.float32, minval=0.0, maxval=5.0)
    out2 = normalize(x2, single_block_bytes=0, max_tile_bytes=64 * 1024)
    jax.block_until_ready(out2)
    x2_db = 10.0 * jnp.log10(jnp.maximum(x2, 1e-10))
    ref2 = (x2_db - x2_db.min()) / (x2_db.max() - x2_db.min())
    assert out2.shape == x2.shape and out2.dtype == jnp.float32
    assert jnp.allclose(out2, ref2, atol=1e-5, rtol=1e-5)

    # Last-resort padded lane-dense path (awkward flattened length, forced tiled).
    x3 = jax.random.uniform(jax.random.PRNGKey(2), (3, 5, 17, 13),
                            dtype=jnp.float32, minval=0.0, maxval=5.0)
    out3 = normalize(x3, single_block_bytes=0, max_tile_bytes=64 * 1024)
    jax.block_until_ready(out3)
    x3_db = 10.0 * jnp.log10(jnp.maximum(x3, 1e-10))
    ref3 = (x3_db - x3_db.min()) / (x3_db.max() - x3_db.min())
    assert out3.shape == x3.shape
    assert jnp.allclose(out3, ref3, atol=1e-5, rtol=1e-5)

    print("KERNEL_OK")
</pallas_src>

<mosaic_0001>
module attributes {stable_mosaic.version = 11 : i64} {
  func.func @_fused_single_block_kernel(%arg0: memref<1x2048xf32, #tpu.memory_space<vmem>>, %arg1: memref<1x2048xf32, #tpu.memory_space<vmem>>) attributes {dimension_semantics = [], scalar_prefetch = 0 : i64, scratch_operands = 0 : i64, tpu.core_type = #tpu.core_type<tc>} {
    %c0 = arith.constant 0 : index
    %c0_0 = arith.constant 0 : index
    %0 = vector.load %arg0[%c0, %c0_0] : memref<1x2048xf32, #tpu.memory_space<vmem>>, vector<1x2048xf32>
    %cst = arith.constant 1.000000e-10 : f32
    %1 = vector.broadcast %cst : f32 to vector<1x2048xf32>
    %2 = arith.maximumf %0, %1 : vector<1x2048xf32>
    %3 = vector.shape_cast %2 : vector<1x2048xf32> to vector<1x1x2048xf32>
    %cst_1 = arith.constant dense<0x7F800000> : vector<1xf32>
    %4 = vector.multi_reduction <minimumf>, %3, %cst_1 [1, 2] : vector<1x1x2048xf32> to vector<1xf32>
    %5 = vector.shape_cast %4 : vector<1xf32> to vector<1x1x1xf32>
    %6 = vector.extract %5[0, 0, 0] : f32 from vector<1x1x1xf32>
    %7 = vector.shape_cast %2 : vector<1x2048xf32> to vector<1x1x2048xf32>
    %cst_2 = arith.constant dense<0xFF800000> : vector<1xf32>
    %8 = vector.multi_reduction <maximumf>, %7, %cst_2 [1, 2] : vector<1x1x2048xf32> to vector<1xf32>
    %9 = vector.shape_cast %8 : vector<1xf32> to vector<1x1x1xf32>
    %10 = vector.extract %9[0, 0, 0] : f32 from vector<1x1x1xf32>
    %11 = math.log %6 : f32
    %cst_3 = arith.constant 0.434294492 : f32
    %12 = arith.mulf %11, %cst_3 : f32
    %cst_4 = arith.constant 1.000000e+01 : f32
    %13 = arith.mulf %cst_4, %12 : f32
    %14 = math.log %10 : f32
    %cst_5 = arith.constant 0.434294492 : f32
    %15 = arith.mulf %14, %cst_5 : f32
    %cst_6 = arith.constant 1.000000e+01 : f32
    %16 = arith.mulf %cst_6, %15 : f32
    %17 = arith.subf %16, %13 : f32
    %cst_7 = arith.constant 1.000000e+00 : f32
    %18 = arith.divf %cst_7, %17 : f32
    %cst_8 = arith.constant 4.34294462 : f32
    %19 = arith.mulf %cst_8, %18 : f32
    %cst_9 = arith.constant 0.000000e+00 : f32
    %20 = arith.subf %cst_9, %13 : f32
    %21 = arith.mulf %20, %18 : f32
    %22 = math.log %2 : vector<1x2048xf32>
    %23 = vector.broadcast %19 : f32 to vector<1x2048xf32>
    %24 = arith.mulf %22, %23 : vector<1x2048xf32>
    %25 = vector.broadcast %21 : f32 to vector<1x2048xf32>
    %26 = arith.addf %24, %25 : vector<1x2048xf32>
    %c0_10 = arith.constant 0 : index
    %c0_11 = arith.constant 0 : index
    %27 = vector.load %arg1[%c0_10, %c0_11] : memref<1x2048xf32, #tpu.memory_space<vmem>>, vector<1x2048xf32>
    tpu.vector_store %arg1[%c0_10, %c0_11], %26 {strides = array<i32>} : memref<1x2048xf32, #tpu.memory_space<vmem>>, vector<1x2048xf32>,
    return
  }
}

</mosaic_0001>

<bundles_post_ra>
// kernel: tpu_custom_call.1
= control target key start
LH: loop header
LB: loop body
LE: loop exit
PB: predicated region body
PF: predicated region fallthrough
CT: control target
= control target key end

     0   :  { %6 = vsyncpa [#allocation3], 0  ;;  %s394_s0 = inlined_call_operand.hbm [shape: f32[1,2048], index: 0, kind: input, shape index: {}]   ;;  %s395_s1 = inlined_call_operand.hbm [shape: f32[1,2048], index: 1, kind: output, shape index: {}]  }
   0x1   :  { %7 = vsyncpa [#allocation4], 0  ;;  %s304_s6 = smov [#allocation2]   ;;  %s256_s10 = scalar_lea.hbm %s394_s0, 256 }
   0x2   :  { %s14_s7 = sshll.u32 %s304_s6, 4  ;;  %p257_p0 = scmp.ne.s32.totalorder %s394_s0, %s256_s10  ;;  %s15_s7 = int_to_ptr.vmem [resolvable:$true] %s14_s7 }
   0x3   :  { %p260_p1 = scmp.lt.u32.totalorder %s256_s10, %s394_s0 }
   0x5   :  { %p262_p2 = pnand %p260_p1, %p257_p0 }
   0x7   :  { %265 = shalt.err (!%p262_p2)
}
   0x8   :  { %s266_s15 = scalar_lea.vmem %s15_s7, 256  ;;  %p271_p4 = scmp.lt.s32.totalorder %s15_s7, %s15_s7 }
   0x9   :  { %p267_p3 = scmp.ne.s32.totalorder %s15_s7, %s266_s15  ;;  %p272_p5 = scmp.lt.s32.totalorder %s266_s15, %s266_s15 }
   0xb   :  { %p273_p6 = por %p272_p5, %p271_p4 }
   0xd   :  { %p274_p7 = pnand %p273_p6, %p267_p3 }
   0xf   :  { %277 = shalt.err (!%p274_p7)
}
  0x10   :  { %17 = dma.hbm_to_vmem [thread:$0]  %s394_s0, 256, %s15_s7, [#allocation3]  }
  0x11   :  { %300 = dma.done.wait [#allocation3], 256  }
  0x12   :  { %301 = vsyncadd [#allocation3], 4294967040  ;;  %v27_v0 = vlaneseq  ;;  %v21_v6 = vld [vmem:[#allocation2] sm:$0xff]  ;;  %v22_v7 = vld [vmem:[#allocation2 + $0x8] sm:$0xff]  ;;  %vm107_vm0 = vcmask 1040384   ;;  %s305_s30 = smov [#allocation5]  }
  0x13   :  { %v328_v12 = vmax.f32 %v21_v6, 1e-10  ;;  %v330_v13 = vmax.f32 %v22_v7, 1e-10  ;;  %s225_s2 = sshll.u32 %s305_s30, 4  ;;  %s226_s2 = int_to_ptr.vmem [resolvable:$true] %s225_s2 }
  0x14   :  { %v28_v1 = vshrl.u32 %v27_v0, 7  ;;  %s278_s3 = scalar_lea.vmem %s226_s2, 256  ;;  %p283_p9 = scmp.lt.s32.totalorder %s226_s2, %s226_s2 }
  0x15   :  { %p279_p8 = scmp.ne.s32.totalorder %s226_s2, %s278_s3  ;;  %p284_p10 = scmp.lt.s32.totalorder %s278_s3, %s278_s3 }
  0x16   :  { %v29_v2 = vsub.s32 0, %v28_v1  ;;  %v33_v3 = vsub.s32 1, %v28_v1  ;;  %v37_v4 = vsub.s32 2, %v28_v1  ;;  %v41_v5 = vsub.s32 3, %v28_v1 }
  0x17   :  { %v45_v8 = vsub.s32 4, %v28_v1  ;;  %v49_v9 = vsub.s32 5, %v28_v1  ;;  %v53_v10 = vsub.s32 6, %v28_v1  ;;  %v57_v11 = vsub.s32 7, %v28_v1  ;;  %p285_p11 = por %p284_p10, %p283_p9 }
  0x18   :  { %v30_v14 = vrot.slane %v328_v12, %v29_v2  ;;  %v34_v15 = vrot.slane %v328_v12, %v33_v3  ;;  %v38_v16 = vrot.slane %v328_v12, %v37_v4  ;;  %v42_v17 = vrot.slane %v328_v12, %v41_v5 }
  0x19   :  { %v46_v18 = vrot.slane %v328_v12, %v45_v8  ;;  %v50_v19 = vrot.slane %v328_v12, %v49_v9  ;;  %v54_v20 = vrot.slane %v328_v12, %v53_v10  ;;  %v58_v21 = vrot.slane %v328_v12, %v57_v11  ;;  %p286_p12 = pnand %p285_p11, %p279_p8 }
  0x1a   :  { %v62_v22 = vrot.slane %v330_v13, %v29_v2  ;;  %v66_v23 = vrot.slane %v330_v13, %v33_v3  ;;  %v70_v24 = vrot.slane %v330_v13, %v37_v4  ;;  %v74_v25 = vrot.slane %v330_v13, %v41_v5 }
  0x1b   :  { %v78_v26 = vrot.slane %v330_v13, %v45_v8  ;;  %v82_v27 = vrot.slane %v330_v13, %v49_v9  ;;  %v86_v28 = vrot.slane %v330_v13, %v53_v10  ;;  %v90_v29 = vrot.slane %v330_v13, %v57_v11 }
  0x1c   :  { %v108_v30 = vsel %vm107_vm0, %v30_v14, inf  ;;  %v109_v31 = vsel %vm107_vm0, %v34_v15, inf  ;;  %v110_v32 = vsel %vm107_vm0, %v38_v16, inf  ;;  %v111_v33 = vsel %vm107_vm0, %v42_v17, inf }
  0x1d   :  { %v112_v34 = vsel %vm107_vm0, %v46_v18, inf  ;;  %v114_v35 = vsel %vm107_vm0, %v50_v19, inf  ;;  %v116_v36 = vsel %vm107_vm0, %v54_v20, inf  ;;  %v118_v37 = vsel %vm107_vm0, %v58_v21, inf }
  0x1e   :  { %v113_v38 = vmin.f32 %v108_v30, %v112_v34  ;;  %v115_v39 = vmin.f32 %v109_v31, %v114_v35  ;;  %v117_v40 = vmin.f32 %v110_v32, %v116_v36  ;;  %v119_v41 = vmin.f32 %v111_v33, %v118_v37 }
  0x1f   :  { %v120_v42 = vsel %vm107_vm0, %v62_v22, inf  ;;  %v122_v43 = vsel %vm107_vm0, %v66_v23, inf  ;;  %v124_v44 = vsel %vm107_vm0, %v70_v24, inf  ;;  %v126_v45 = vsel %vm107_vm0, %v74_v25, inf }
  0x20   :  { %v121_v46 = vmin.f32 %v113_v38, %v120_v42  ;;  %v123_v47 = vmin.f32 %v115_v39, %v122_v43  ;;  %v125_v48 = vmin.f32 %v117_v40, %v124_v44  ;;  %v127_v49 = vmin.f32 %v119_v41, %v126_v45 }
  0x21   :  { %v128_v50 = vsel %vm107_vm0, %v78_v26, inf  ;;  %v130_v51 = vsel %vm107_vm0, %v82_v27, inf  ;;  %v132_v52 = vsel %vm107_vm0, %v86_v28, inf  ;;  %v134_v53 = vsel %vm107_vm0, %v90_v29, inf }
  0x22   :  { %v129_v54 = vmin.f32 %v121_v46, %v128_v50  ;;  %v131_v55 = vmin.f32 %v123_v47, %v130_v51  ;;  %v133_v56 = vmin.f32 %v125_v48, %v132_v52  ;;  %v135_v57 = vmin.f32 %v127_v49, %v134_v53 }
  0x23   :  { %v148_v58 = vsel %vm107_vm0, %v30_v14, -inf  ;;  %v149_v59 = vsel %vm107_vm0, %v34_v15, -inf  ;;  %v150_v60 = vsel %vm107_vm0, %v38_v16, -inf  ;;  %v151_v61 = vsel %vm107_vm0, %v42_v17, -inf }
  0x24   :  { %v136_v62 = vmin.f32 %v129_v54, %v131_v55  ;;  %v137_v63 = vmin.f32 %v133_v56, %v135_v57  ;;  %v152_v0 = vsel %vm107_vm0, %v46_v18, -inf  ;;  %v154_v1 = vsel %vm107_vm0, %v50_v19, -inf }
  0x25   :  { %v153_v2 = vmax.f32 %v148_v58, %v152_v0  ;;  %v155_v3 = vmax.f32 %v149_v59, %v154_v1  ;;  %v156_v4 = vsel %vm107_vm0, %v54_v20, -inf  ;;  %v158_v5 = vsel %vm107_vm0, %v58_v21, -inf }
  0x26   :  { %v138_v6 = vmin.f32 %v136_v62, %v137_v63  ;;  %v157_v7 = vmax.f32 %v150_v60, %v156_v4  ;;  %v159_v8 = vmax.f32 %v151_v61, %v158_v5  ;;  %v160_v9 = vsel %vm107_vm0, %v62_v22, -inf }
  0x27   :  { %v161_v10 = vmax.f32 %v153_v2, %v160_v9  ;;  %v162_v11 = vsel %vm107_vm0, %v66_v23, -inf  ;;  %v164_v14 = vsel %vm107_vm0, %v70_v24, -inf  ;;  %v166_v15 = vsel %vm107_vm0, %v74_v25, -inf }
  0x28   :  { %139 = vmin.xlane.f32.xlu0 %v138_v6  ;;  %v163_v16 = vmax.f32 %v155_v3, %v162_v11  ;;  %v165_v17 = vmax.f32 %v157_v7, %v164_v14  ;;  %v167_v18 = vmax.f32 %v159_v8, %v166_v15  ;;  %v168_v19 = vsel %vm107_vm0, %v78_v26, -inf }
  0x29   :  { %v169_v20 = vmax.f32 %v161_v10, %v168_v19  ;;  %v170_v21 = vsel %vm107_vm0, %v82_v27, -inf  ;;  %v172_v30 = vsel %vm107_vm0, %v86_v28, -inf  ;;  %v174_v22 = vsel %vm107_vm0, %v90_v29, -inf }
  0x2a   :  { %v171_v31 = vmax.f32 %v163_v16, %v170_v21  ;;  %v173_v32 = vmax.f32 %v165_v17, %v172_v30  ;;  %v175_v23 = vmax.f32 %v167_v18, %v174_v22 }
  0x2c   :  { %v176_v33 = vmax.f32 %v169_v20, %v171_v31  ;;  %v177_v24 = vmax.f32 %v173_v32, %v175_v23 }
  0x2e   :  { %v178_v34 = vmax.f32 %v176_v33, %v177_v24 }
  0x30   :  { %179 = vmax.xlane.f32.xlu0 %v178_v34 }
  0xb5   :  { %v140_v25 = vpop.xlane.xlu0 %139 }
  0xb6   :  { %v141_v35 = vrot.slane %v140_v25, 4 }
  0xb8   :  { %v142_v36 = vmin.f32 %v140_v25, %v141_v35 }
  0xba   :  { %v143_v37 = vrot.slane %v142_v36, 2 }
  0xbc   :  { %v144_v38 = vmin.f32 %v142_v36, %v143_v37 }
  0xbd   :  { %v180_v26 = vpop.xlane.xlu0 %179 }
  0xbe   :  { %v181_v39 = vrot.slane %v180_v26, 4  ;;  %v145_v40 = vrot.slane %v144_v38, 1 }
  0xc0   :  { %v182_v27 = vmax.f32 %v180_v26, %v181_v39  ;;  %v146_v41 = vmin.f32 %v144_v38, %v145_v40 }
  0xc2   :  { %v183_v28 = vrot.slane %v182_v27, 2  ;;  %234 = vpush %v146_v41 }
  0xc4   :  { %v184_v29 = vmax.f32 %v182_v27, %v183_v28 }
  0xc6   :  { %v185_v42 = vrot.slane %v184_v29, 1 }
  0xc8   :  { %v186_v43 = vmax.f32 %v184_v29, %v185_v42 }
  0xca   :  { %236 = vpush %v186_v43 }
  0xf3   :  { %s235_s0 = spop %234 }
  0xf4   :  { %v188_v44 = vstv %s235_s0 }
  0xf5   :  { %246 = vlog2.f32 %v188_v44 }
  0xfb   :  { %s237_s18 = spop %236 }
  0xfc   :  { %v194_v45 = vstv %s237_s18 }
  0xfd   :  { %248 = vlog2.f32 %v194_v45 }
  0xff   :  { %v247_v46 = vpop.eup %246 }
 0x100   :  { %v190_v47 = vmul.f32 0.6931472, %v247_v46 }
 0x102   :  { %238 = vpush %v190_v47 }
 0x107   :  { %v249_v48 = vpop.eup %248 }
 0x108   :  { %v196_v49 = vmul.f32 0.6931472, %v249_v48 }
 0x10a   :  { %240 = vpush %v196_v49 }
 0x133   :  { %s239_s19 = spop %238 }
 0x134   :  { %s192_s20 = smul.f32 0.4342945, %s239_s19 }
 0x136   :  { %s193_s23 = smul.f32 10.0, %s192_s20 }
 0x138   :  { %s205_s27 = ssub.f32 0.0, %s193_s23 }
 0x13b   :  { %s241_s21 = spop %240 }
 0x13c   :  { %s198_s22 = smul.f32 0.4342945, %s241_s21 }
 0x13e   :  { %s199_s24 = smul.f32 10.0, %s198_s22 }
 0x140   :  { %s200_s25 = ssub.f32 %s199_s24, %s193_s23 }
 0x142   :  { %v201_v50 = vstv %s200_s25 }
 0x143   :  { %250 = vrcp.f32 %v201_v50 }
 0x144   :  { %252 = vlog2.f32 %v328_v12 }
 0x145   :  { %254 = vlog2.f32 %v330_v13 }
 0x14d   :  { %v251_v51 = vpop.eup %250 }
 0x14e   :  { %242 = vpush %v251_v51  ;;  %v253_v52 = vpop.eup %252 }
 0x14f   :  { %v255_v53 = vpop.eup %254  ;;  %v208_v54 = vmul.f32 0.6931472, %v253_v52 }
 0x150   :  { %v210_v55 = vmul.f32 0.6931472, %v255_v53 }
 0x17f   :  { %s243_s26 = spop %242 }
 0x180   :  { %s204_s28 = smul.f32 4.3429446, %s243_s26 }
 0x181   :  { %s206_s29 = smul.f32 %s243_s26, %s205_s27 }
 0x182   :  { %v211_v56 = vstv %s204_s28 }
 0x183   :  { %v212_v57 = vmul.f32 %v211_v56, %v208_v54  ;;  %v213_v58 = vmul.f32 %v211_v56, %v210_v55  ;;  %v214_v59 = vstv %s206_s29 }
 0x185   :  { %v215_v60 = vadd.f32 %v214_v59, %v212_v57  ;;  %v216_v61 = vadd.f32 %v214_v59, %v213_v58 }
 0x187   :  { %217 = vst [vmem:[#allocation5] sm:$0xff] %v215_v60  ;;  %218 = vst [vmem:[#allocation5 + $0x8] sm:$0xff] %v216_v61 }
 0x188   :  { %289 = shalt.err (!%p286_p12)
}
 0x189   :  { %s290_s6 = scalar_lea.hbm %s395_s1, 256 }
 0x18a   :  { %p291_p13 = scmp.ne.s32.totalorder %s395_s1, %s290_s6  ;;  %p294_p0 = scmp.lt.u32.totalorder %s290_s6, %s395_s1 }
 0x18c   :  { %p296_p1 = pnand %p294_p0, %p291_p13 }
 0x18e   :  { %299 = shalt.err (!%p296_p1)
}
 0x18f   :  { %228 = dma.vmem_to_hbm [thread:$0]  %s226_s2, 256, %s395_s1, [#allocation4]  }
 0x190   :  { %302 = dma.done.wait [#allocation4], 256  }
 0x191   :  { %303 = vsyncadd [#allocation4], 4294967040 }
 0x192   :  { %232 = vsyncpa [#allocation3], 1 }
 0x193   :  { %233 = vsyncpa [#allocation4], 1 }

</bundles_post_ra>
